<compile_context>
chip_gen: v5e
topology: v5e:2x2
jax: 0.10.0
libtpu: 0.0.40
codegen_flags: <defaults>
</compile_context>

<pallas_src>
import functools

import jax
import jax.numpy as jnp
from jax import lax
from jax.experimental import pallas as pl
from jax.experimental.pallas import tpu as pltpu

BETA = 1.0
SMOOTH = 1e-7
LANES = 128


def _fbeta_kernel(preds_ref, trues_ref, out_ref, acc_ref, *,
                  s_tile, hw, m_total, n_valid):
    """One grid step handles an (N, S_TILE, 128) slab of both inputs.

    preds_ref, trues_ref : VMEM (N, S_TILE, 128), native dtype (cast here)
    out_ref              : VMEM (1, 1) float32   (final mean of 1 - fb)
    acc_ref              : VMEM (S_TILE, 128) float32 per-lane accumulator
    hw                   : H*W  (channel-0 extent to drop, binary=False path)
    m_total              : C*H*W (valid extent along the flattened axis)
    n_valid              : (C-1)*H*W, denominator of the final mean
    """
    j = pl.program_id(0)

    @pl.when(j == 0)
    def _():
        acc_ref[...] = jnp.zeros_like(acc_ref)

    beta2 = BETA * BETA
    p = preds_ref[...].astype(jnp.float32)        # (N, S_TILE, 128)
    t = trues_ref[...].astype(jnp.float32)

    # Batch reduction (PyTorch dim=(0,)) stays on the VPU; N is small, the
    # kernel is HBM-bound, so the MXU would only add latency here.
    tp = jnp.sum(t * p, axis=0)                   # (S_TILE, 128)
    ts = jnp.sum(beta2 * t + p, axis=0)           # (S_TILE, 128)

    # Global flattened index (per-sample C*H*W axis) of every tile element.
    # Used to (a) drop channel 0: flat < hw, and (b) mask the ragged/padded
    # tail: flat >= m_total (garbage from partial edge blocks must be masked).
    s_idx = lax.broadcasted_iota(jnp.int32, (s_tile, LANES), 0)
    l_idx = lax.broadcasted_iota(jnp.int32, (s_tile, LANES), 1)
    flat = (j * s_tile + s_idx) * LANES + l_idx
    valid = jnp.logical_and(flat >= hw, flat < m_total)

    num = jnp.where(valid, (beta2 + 1.0) * tp, 0.0)
    den = jnp.where(valid, ts, 0.0)
    fb = (num + SMOOTH) / (den + SMOOTH)          # masked positions -> fb == 1
    acc_ref[...] += 1.0 - fb                      # masked positions add 0

    @pl.when(j == pl.num_programs(0) - 1)
    def _():
        total = jnp.sum(acc_ref[...])             # one XLU reduce, epilogue only
        out_ref[...] = (total * jnp.float32(1.0 / n_valid)).reshape(1, 1)


def _round_up(x, m):
    return ((x + m - 1) // m) * m


def fbeta_loss(preds, trues):
    """FbetaLoss forward: preds, trues are NCHW arrays of equal shape."""
    assert preds.shape == trues.shape, "preds/trues shape mismatch"
    n, c, h, w = preds.shape
    assert c > 1, "binary=False drops channel 0; need C > 1"

    hw = h * w
    m_total = c * hw                # full flattened length, channel 0 included
    n_valid = (c - 1) * hw          # elements that survive the channel drop

    # Free, contiguous reshape; no slice / astype / pad copies in the wrapper.
    p2 = preds.reshape(n, m_total)
    t2 = trues.reshape(n, m_total)

    m_pad = _round_up(m_total, LANES)
    if m_pad != m_total:
        # Rare: only when C*H*W is not a multiple of 128. Pad content is
        # irrelevant - the kernel masks everything with flat >= m_total.
        p2 = jnp.pad(p2, ((0, 0), (0, m_pad - m_total)))
        t2 = jnp.pad(t2, ((0, 0), (0, m_pad - m_total)))

    s_total = m_pad // LANES
    p3 = p2.reshape(n, s_total, LANES)
    t3 = t2.reshape(n, s_total, LANES)

    # Tile sizing: target ~1 MiB per input block (x2 inputs x2 pipeline buffers
    # ~= 4 MiB + <=1 MiB scratch), well inside the default scoped VMEM on
    # v5e/v6e/v7x, while large enough to sit near the HBM roofline.
    itemsize = int(max(p3.dtype.itemsize, t3.dtype.itemsize))
    sub_mult = {4: 8, 2: 16, 1: 32}.get(itemsize, 8)   # sublane tiling by dtype
    target_bytes = 1 << 20
    s_tile = max(sub_mult, target_bytes // (n * LANES * itemsize))
    if s_tile >= s_total:
        s_tile = s_total                                # full extent: legal block
    else:
        s_tile = max(sub_mult, (s_tile // sub_mult) * sub_mult)
    s_tile = int(s_tile)

    grid = (pl.cdiv(s_total, s_tile),)
    kernel = functools.partial(
        _fbeta_kernel, s_tile=s_tile, hw=hw, m_total=m_total, n_valid=n_valid)

    # TODO(synk): on v7x, shard the S range across the 2 TensorCores (leading
    # "parallel" grid axis + per-core partial outputs summed in the wrapper).
    out = pl.pallas_call(
        kernel,
        out_shape=jax.ShapeDtypeStruct((1, 1), jnp.float32),
        grid_spec=pltpu.PrefetchScalarGridSpec(
            num_scalar_prefetch=0,
            grid=grid,
            in_specs=[
                pl.BlockSpec((n, s_tile, LANES), lambda j: (0, j, 0)),
                pl.BlockSpec((n, s_tile, LANES), lambda j: (0, j, 0)),
            ],
            out_specs=pl.BlockSpec((1, 1), lambda j: (0, 0)),
            scratch_shapes=[pltpu.VMEM((s_tile, LANES), jnp.float32)],
        ),
        compiler_params=pltpu.CompilerParams(
            dimension_semantics=("arbitrary",),
        ),
    )(p3, t3)
    return out[0, 0]


def _fbeta_loss_ref(preds, trues):
    beta2 = BETA * BETA
    trues = trues[:, 1:, ...].astype(jnp.float32)
    preds = preds[:, 1:, ...].astype(jnp.float32)
    p = (beta2 + 1.0) * (trues * preds).sum(axis=0)
    s = (beta2 * trues + preds).sum(axis=0)
    fb = (p + SMOOTH) / (s + SMOOTH)
    return (1.0 - fb).mean()


if __name__ == "__main__":
    key = jax.random.PRNGKey(0)
    kp, kt = jax.random.split(key)
    # Small NCHW shapes: batch=2, channels=4, spatial=16x16.
    preds = jax.nn.softmax(
        jax.random.normal(kp, (2, 4, 16, 16), dtype=jnp.float32), axis=1
    )
    trues = jax.nn.one_hot(
        jax.random.randint(kt, (2, 16, 16), 0, 4), 4, dtype=jnp.float32
    ).transpose(0, 3, 1, 2)  # -> NCHW

    loss = jax.block_until_ready(fbeta_loss(preds, trues))
    ref = _fbeta_loss_ref(preds, trues)
    assert jnp.allclose(loss, ref, rtol=1e-5, atol=1e-6), (loss, ref)
    print("KERNEL_OK")
</pallas_src>

<mosaic_0001>
module attributes {stable_mosaic.version = 11 : i64} {
  func.func @_fbeta_kernel(%arg0: i32, %arg1: memref<2x8x128xf32, #tpu.memory_space<vmem>>, %arg2: memref<2x8x128xf32, #tpu.memory_space<vmem>>, %arg3: memref<1x1xf32, #tpu.memory_space<vmem>>, %arg4: memref<8x128xf32, #tpu.memory_space<vmem>>) attributes {dimension_semantics = [#tpu.dimension_semantics<arbitrary>], iteration_bounds = array<i64: 1>, scalar_prefetch = 0 : i64, scratch_operands = 1 : i64, tpu.core_type = #tpu.core_type<tc>, window_params = [{transform_indices = @transform_0, window_bounds = array<i64: 2, 8, 128>}, {transform_indices = @transform_1, window_bounds = array<i64: 2, 8, 128>}, {pipeline_mode = #tpu.pipeline_mode<synchronous>, transform_indices = @transform_2, window_bounds = array<i64: 1, 1>}]} {
    %c0_i32 = arith.constant 0 : i32
    %0 = arith.cmpi eq, %arg0, %c0_i32 : i32
    %1 = arith.extui %0 : i1 to i32
    %c0_i32_0 = arith.constant 0 : i32
    %2 = arith.cmpi ne, %1, %c0_i32_0 : i32
    scf.if %2 {
      %cst_20 = arith.constant 0.000000e+00 : f32
      %43 = vector.broadcast %cst_20 : f32 to vector<8x128xf32>
      %c0_21 = arith.constant 0 : index
      %c0_22 = arith.constant 0 : index
      %44 = vector.load %arg4[%c0_21, %c0_22] : memref<8x128xf32, #tpu.memory_space<vmem>>, vector<8x128xf32>
      tpu.vector_store %arg4[%c0_21, %c0_22], %43 {strides = array<i32>} : memref<8x128xf32, #tpu.memory_space<vmem>>, vector<8x128xf32>,
    } else {
    }
    %c0 = arith.constant 0 : index
    %c0_1 = arith.constant 0 : index
    %c0_2 = arith.constant 0 : index
    %3 = vector.load %arg1[%c0, %c0_1, %c0_2] : memref<2x8x128xf32, #tpu.memory_space<vmem>>, vector<2x8x128xf32>
    %c0_3 = arith.constant 0 : index
    %c0_4 = arith.constant 0 : index
    %c0_5 = arith.constant 0 : index
    %4 = vector.load %arg2[%c0_3, %c0_4, %c0_5] : memref<2x8x128xf32, #tpu.memory_space<vmem>>, vector<2x8x128xf32>
    %5 = arith.mulf %4, %3 : vector<2x8x128xf32>
    %cst = arith.constant dense<0.000000e+00> : vector<8x128xf32>
    %6 = vector.multi_reduction <add>, %5, %cst [0] : vector<2x8x128xf32> to vector<8x128xf32>
    %cst_6 = arith.constant 1.000000e+00 : f32
    %7 = vector.broadcast %cst_6 : f32 to vector<2x8x128xf32>
    %8 = arith.mulf %7, %4 : vector<2x8x128xf32>
    %9 = arith.addf %8, %3 : vector<2x8x128xf32>
    %cst_7 = arith.constant dense<0.000000e+00> : vector<8x128xf32>
    %10 = vector.multi_reduction <add>, %9, %cst_7 [0] : vector<2x8x128xf32> to vector<8x128xf32>
    %11 = tpu.iota {dimensions = array<i32: 0>} : vector<8x128xi32>
    %12 = tpu.iota {dimensions = array<i32: 1>} : vector<8x128xi32>
    %c8_i32 = arith.constant 8 : i32
    %13 = arith.muli %arg0, %c8_i32 : i32
    %14 = vector.broadcast %13 : i32 to vector<8x128xi32>
    %15 = arith.addi %14, %11 : vector<8x128xi32>
    %c128_i32 = arith.constant 128 : i32
    %16 = vector.broadcast %c128_i32 : i32 to vector<8x128xi32>
    %17 = arith.muli %15, %16 : vector<8x128xi32>
    %18 = arith.addi %17, %12 : vector<8x128xi32>
    %c256_i32 = arith.constant 256 : i32
    %19 = vector.broadcast %c256_i32 : i32 to vector<8x128xi32>
    %20 = arith.cmpi sge, %18, %19 : vector<8x128xi32>
    %c1024_i32 = arith.constant 1024 : i32
    %21 = vector.broadcast %c1024_i32 : i32 to vector<8x128xi32>
    %22 = arith.cmpi slt, %18, %21 : vector<8x128xi32>
    %23 = arith.andi %20, %22 : vector<8x128xi1>
    %cst_8 = arith.constant 2.000000e+00 : f32
    %24 = vector.broadcast %cst_8 : f32 to vector<8x128xf32>
    %25 = arith.mulf %24, %6 : vector<8x128xf32>
    %cst_9 = arith.constant 0.000000e+00 : f32
    %26 = vector.broadcast %cst_9 : f32 to vector<8x128xf32>
    %27 = arith.select %23, %25, %26 : vector<8x128xi1>, vector<8x128xf32>
    %cst_10 = arith.constant 0.000000e+00 : f32
    %28 = vector.broadcast %cst_10 : f32 to vector<8x128xf32>
    %29 = arith.select %23, %10, %28 : vector<8x128xi1>, vector<8x128xf32>
    %cst_11 = arith.constant 1.000000e-07 : f32
    %30 = vector.broadcast %cst_11 : f32 to vector<8x128xf32>
    %31 = arith.addf %27, %30 : vector<8x128xf32>
    %cst_12 = arith.constant 1.000000e-07 : f32
    %32 = vector.broadcast %cst_12 : f32 to vector<8x128xf32>
    %33 = arith.addf %29, %32 : vector<8x128xf32>
    %34 = arith.divf %31, %33 : vector<8x128xf32>
    %c0_13 = arith.constant 0 : index
    %c0_14 = arith.constant 0 : index
    %35 = vector.load %arg4[%c0_13, %c0_14] : memref<8x128xf32, #tpu.memory_space<vmem>>, vector<8x128xf32>
    %cst_15 = arith.constant 1.000000e+00 : f32
    %36 = vector.broadcast %cst_15 : f32 to vector<8x128xf32>
    %37 = arith.subf %36, %34 : vector<8x128xf32>
    %38 = arith.addf %35, %37 : vector<8x128xf32>
    %c0_16 = arith.constant 0 : index
    %c0_17 = arith.constant 0 : index
    %39 = vector.load %arg4[%c0_16, %c0_17] : memref<8x128xf32, #tpu.memory_space<vmem>>, vector<8x128xf32>
    tpu.vector_store %arg4[%c0_16, %c0_17], %38 {strides = array<i32>} : memref<8x128xf32, #tpu.memory_space<vmem>>, vector<8x128xf32>,
    %c0_i32_18 = arith.constant 0 : i32
    %40 = arith.cmpi eq, %arg0, %c0_i32_18 : i32
    %41 = arith.extui %40 : i1 to i32
    %c0_i32_19 = arith.constant 0 : i32
    %42 = arith.cmpi ne, %41, %c0_i32_19 : i32
    scf.if %42 {
      %c0_20 = arith.constant 0 : index
      %c0_21 = arith.constant 0 : index
      %43 = vector.load %arg4[%c0_20, %c0_21] : memref<8x128xf32, #tpu.memory_space<vmem>>, vector<8x128xf32>
      %44 = vector.shape_cast %43 : vector<8x128xf32> to vector<1x8x128xf32>
      %cst_22 = arith.constant dense<0.000000e+00> : vector<1xf32>
      %45 = vector.multi_reduction <add>, %44, %cst_22 [1, 2] : vector<1x8x128xf32> to vector<1xf32>
      %46 = vector.shape_cast %45 : vector<1xf32> to vector<1x1x1xf32>
      %47 = vector.extract %46[0, 0, 0] : f32 from vector<1x1x1xf32>
      %cst_23 = arith.constant 0.00130208337 : f32
      %48 = arith.mulf %47, %cst_23 : f32
      %49 = vector.broadcast %48 : f32 to vector<1x1xf32>
      %c0_24 = arith.constant 0 : index
      %c0_25 = arith.constant 0 : index
      %50 = vector.load %arg3[%c0_24, %c0_25] : memref<1x1xf32, #tpu.memory_space<vmem>>, vector<1x1xf32>
      tpu.vector_store %arg3[%c0_24, %c0_25], %49 {strides = array<i32>} : memref<1x1xf32, #tpu.memory_space<vmem>>, vector<1x1xf32>,
    } else {
    }
    return
  }
  func.func @transform_0(%arg0: i32) -> (i32, i32, i32) {
    %c0_i32 = arith.constant 0 : i32
    %c0_i32_0 = arith.constant 0 : i32
    %c0_i32_1 = arith.constant 0 : i32
    return %c0_i32, %arg0, %c0_i32_0 : i32, i32, i32
  }
  func.func @transform_1(%arg0: i32) -> (i32, i32, i32) {
    %c0_i32 = arith.constant 0 : i32
    %c0_i32_0 = arith.constant 0 : i32
    %c0_i32_1 = arith.constant 0 : i32
    return %c0_i32, %arg0, %c0_i32_0 : i32, i32, i32
  }
  func.func @transform_2(%arg0: i32) -> (i32, i32) {
    %c0_i32 = arith.constant 0 : i32
    %c0_i32_0 = arith.constant 0 : i32
    %c0_i32_1 = arith.constant 0 : i32
    return %c0_i32, %c0_i32_0 : i32, i32
  }
}

</mosaic_0001>

<bundles_post_ra>
// kernel: tpu_custom_call.1
= control target key start
LH: loop header
LB: loop body
LE: loop exit
PB: predicated region body
PF: predicated region fallthrough
CT: control target
= control target key end

     0   :  { %7 = vsyncpa [#allocation4], 0  ;;  %s254_s0 = inlined_call_operand.hbm [shape: f32[2,8,128], index: 0, kind: input, shape index: {}]   ;;  %s255_s1 = inlined_call_operand.hbm [shape: f32[2,8,128], index: 1, kind: input, shape index: {}]   ;;  %s256_s2 = inlined_call_operand.hbm [shape: f32[1,1], index: 2, kind: output, shape index: {}]  }
   0x1   :  { %8 = vsyncpa [#allocation7], 0 }
   0x2   :  { %9 = vsyncpa [#allocation5], 0  ;;  %s14_s11 = sshll.u32 %s254_s0, 4  ;;  %s217_s12 = smov [#allocation3]   ;;  %s15_s11 = int_to_ptr.hbm [resolvable:$true] %s14_s11 }
   0x3   :  { %s16_s13 = sshll.u32 %s217_s12, 4  ;;  %s27_s16 = sshll.u32 %s255_s1, 4  ;;  %s17_s13 = int_to_ptr.vmem [resolvable:$true] %s16_s13  ;;  %s28_s16 = int_to_ptr.hbm [resolvable:$true] %s27_s16 }
   0x4   :  { %s218_s17 = smov 128   ;;  %s219_s18 = smov 8  }
   0x5   :  { %22 = dma.hbm_to_vmem [thread:$0]  %s15_s11, 256, %s17_s13, [#allocation4], %s218_s17, %s218_s17, %s219_s18  }
   0x6   :  { %s220_s19 = smov [#allocation6]  }
   0x7   :  { %s29_s20 = sshll.u32 %s220_s19, 4  ;;  %s30_s20 = int_to_ptr.vmem [resolvable:$true] %s29_s20 }
   0x8   :  { %35 = dma.hbm_to_vmem [thread:$0]  %s28_s16, 256, %s30_s20, [#allocation7], %s218_s17, %s218_s17, %s219_s18  }
   0x9   :  { %211 = dma.done.wait [#allocation4], 256  }
   0xa   :  { %212 = vsyncadd [#allocation4], 4294967040 }
   0xb   :  { %213 = dma.done.wait [#allocation7], 256  }
   0xc   :  { %214 = vsyncadd [#allocation7], 4294967040  ;;  %v59_v0 = vlaneseq  ;;  %v49_v5 = vld [vmem:[#allocation3] sm:$0xff]  ;;  %v50_v6 = vld [vmem:[#allocation3 + $0x8] sm:$0xff]  ;;  %s221_s0 = smov [#allocation8]   ;;  %s119_s23 = sshll.u32 %s256_s2, 4  ;;  %s120_s23 = int_to_ptr.hbm [resolvable:$true] %s119_s23 }
   0xd   :  { %v51_v7 = vld [vmem:[#allocation6] sm:$0xff]  ;;  %v52_v8 = vld [vmem:[#allocation6 + $0x8] sm:$0xff]  ;;  %s117_s1 = sshll.u32 %s221_s0, 4  ;;  %vm110_vm7 = vcmask 0   ;;  %s118_s1 = int_to_ptr.vmem [resolvable:$true] %s117_s1 }
   0xe   :  { %v60_v1 = vshrl.u32 %v59_v0, 7  ;;  %v62_v2 = vand.u32 127, %v59_v0  ;;  %v56_v9 = vadd.f32 %v51_v7, %v49_v5  ;;  %v57_v10 = vadd.f32 %v52_v8, %v50_v6 }
   0xf   :  { %v53_v14 = vmul.f32 %v51_v7, %v49_v5  ;;  %v54_v15 = vmul.f32 %v52_v8, %v50_v6 }
  0x10   :  { %v66_v3 = vmul.u32 128, %v60_v1  ;;  %v58_v12 = vadd.f32 %v57_v10, %v56_v9 }
  0x11   :  { %v55_v17 = vadd.f32 %v54_v15, %v53_v14 }
  0x12   :  { %v67_v4 = vadd.s32 %v66_v3, %v62_v2 }
  0x13   :  { %v71_v19 = vmul.f32 2.0, %v55_v17 }
  0x14   :  { %vm68_vm0 = vcmp.ge.s32.totalorder %v67_v4, 256  ;;  %vm69_vm1 = vcmp.lt.s32.totalorder %v67_v4, 1024 }
  0x15   :  { %vm243_vm2 = vmand %vm68_vm0, %vm69_vm1 }
  0x16   :  { %v73_v13 = vsel %vm243_vm2, %v58_v12, 0.0  ;;  %v72_v24 = vsel %vm243_vm2, %v71_v19, 0.0 }
  0x17   :  { %v75_v16 = vadd.f32 1e-07, %v73_v13  ;;  %v74_v27 = vadd.f32 1e-07, %v72_v24 }
  0x19   :  { %137 = vrcp.f32 %v75_v16  ;;  %v87_v21 = vand.u32 2147483648, %v75_v16  ;;  %vm81_vm3 = vweird.f32 %v75_v16  ;;  %v85_v23 = vand.u32 2147483647, %v75_v16 }
  0x1b   :  { %v88_v26 = vor.u32 1.1754944e-38, %v87_v21  ;;  %vm86_vm6 = vcmp.eq.f32.partialorder %v85_v23, 8.507059e+37 }
  0x1f   :  { %v138_v18 = vpop.eup %137 }
  0x20   :  { %v77_v20 = vmul.f32 %v138_v18, %v75_v16  ;;  %vm82_vm4 = vweird.f32 %v138_v18 }
  0x21   :  { %vm83_vm5 = vmor %vm81_vm3, %vm82_vm4 }
  0x22   :  { %v78_v22 = vsub.f32 1.0, %v77_v20 }
  0x24   :  { %v79_v25 = vmul.f32 %v138_v18, %v78_v22 }
  0x26   :  { %v80_v28 = vadd.f32 %v138_v18, %v79_v25 }
  0x28   :  { %v84_v29 = vsel %vm83_vm5, %v138_v18, %v80_v28 }
  0x29   :  { %v89_v30 = vsel %vm86_vm6, %v88_v26, %v84_v29 }
  0x2a   :  { %v90_v31 = vmul.f32 %v89_v30, %v74_v27 }
  0x2c   :  { %v92_v32 = vsub.f32 1.0, %v90_v31 }
  0x2e   :  { %99 = vadd.xlane.f32.xlu0 %v92_v32 }
  0xa1   :  { %v100_v33 = vpop.xlane.xlu0 %99 }
  0xa2   :  { %v101_v34 = vrot.slane %v100_v33, 4 }
  0xa4   :  { %v102_v35 = vadd.f32 %v101_v34, %v100_v33 }
  0xa6   :  { %v103_v36 = vrot.slane %v102_v35, 2 }
  0xa8   :  { %v104_v37 = vadd.f32 %v103_v36, %v102_v35 }
  0xaa   :  { %v105_v38 = vrot.slane %v104_v37, 1 }
  0xac   :  { %v106_v39 = vadd.f32 %v105_v38, %v104_v37 }
  0xae   :  { %130 = vpush %v106_v39 }
  0xdf   :  { %s131_s24 = spop %130 }
  0xe0   :  { %s108_s25 = smul.f32 0.0013020834, %s131_s24 }
  0xe2   :  { %v109_v40 = vstv %s108_s25 }
  0xe3   :  { %111 = vst.msk [vmem:[#allocation8] sm:$0x1] %vm110_vm7, %v109_v40 }
  0xe4   :  { %122 = dma.vmem_to_hbm [thread:$0]  %s118_s1, 16, %s120_s23, [#allocation5]  }
  0xe5   :  { %215 = dma.done.wait [#allocation5], 16  }
  0xe6   :  { %216 = vsyncadd [#allocation5], 4294967280 }
  0xe7   :  { %127 = vsyncpa [#allocation4], 1 }
  0xe8   :  { %128 = vsyncpa [#allocation7], 1 }
  0xe9   :  { %129 = vsyncpa [#allocation5], 1 }

</bundles_post_ra>
